<compile_context>
chip_gen: v7x
topology: tpu7x:2x2x1
jax: 0.10.0
libtpu: 0.0.40
codegen_flags: <defaults>
</compile_context>

<pallas_src>
import functools

import numpy as np
import jax
import jax.numpy as jnp
from jax.experimental import pallas as pl
from jax.experimental.pallas import tpu as pltpu

LN_EPS = 1e-5  # torch.nn.LayerNorm default


def _patch_embed_kernel(x_ref, w_ref, b_ref, g2_ref, pos_ref, cls_ref, out_ref):
    # x_ref: (TN, patch_dim) f32 patch rows in '(c p1 p2)' order; row 0 of the
    # first sequence tile is a dummy (zero) slot reserved for the cls token.
    x = x_ref[...]

    # --- LayerNorm(patch_dim): normalization only (affine folded into W/b) --
    mu = jnp.mean(x, axis=-1, keepdims=True)
    xc = x - mu
    var = jnp.mean(xc * xc, axis=-1, keepdims=True)          # two-pass variance
    xh = xc * jax.lax.rsqrt(var + LN_EPS)

    # --- Linear(patch_dim, dim) on the MXU, f32 accumulate ------------------
    y = jnp.dot(xh, w_ref[...], preferred_element_type=jnp.float32) + b_ref[...]

    # --- LayerNorm(dim): beta folded into pos_ref rows ----------------------
    mu2 = jnp.mean(y, axis=-1, keepdims=True)
    yc = y - mu2
    var2 = jnp.mean(yc * yc, axis=-1, keepdims=True)
    yh = yc * jax.lax.rsqrt(var2 + LN_EPS)

    # --- scale + (pos_embedding + ln2_beta); full-tile store ----------------
    out_ref[...] = (yh * g2_ref[...] + pos_ref[...]).astype(out_ref.dtype)

    # cls row (cls_token + pos[0], no LN/Linear applied): written in place on
    # the first sequence tile -> no wrapper-side concat / output rewrite.
    @pl.when(pl.program_id(0) == 0)
    def _():
        out_ref[0:1, :] = cls_ref[...].astype(out_ref.dtype)
    # Dropout(p=0.0) is the identity -> no-op.


def image_embedder_forward(img, params, *, patch_size, seq_tile_cap=512,
                           out_dtype=jnp.float32):
    """img: (b, 3, H, W) float32 NCHW (PyTorch convention)."""
    b, c, H, W = img.shape
    p = patch_size
    h, w = H // p, W // p
    n = h * w
    n_tot = n + 1                                   # +1 cls row
    patch_dim = c * p * p
    dim = params["w"].shape[1]

    # --- Patchify (single wrapper-side copy; the pad below fuses into it) ---
    # 'b c (h p1) (w p2) -> b (h w) (c p1 p2)' keeps p2 as the stride-1 axis;
    # the static row permutation back to PyTorch's '(p1 p2 c)' order is
    # applied to W (free) instead of the image data.
    patches = img.reshape(b, c, h, p, w, p)
    patches = jnp.transpose(patches, (0, 2, 4, 1, 3, 5)).reshape(b, n, patch_dim)

    # Sequence tile: multiple of 8, <= cap (see header for per-gen guidance).
    cap = max(8, (seq_tile_cap // 8) * 8)
    tn = max(8, min(cap, (n_tot // 8) * 8))
    n_seq_pad = ((n_tot + tn - 1) // tn) * tn       # inputs padded to full tiles
    n_seq_tiles = n_seq_pad // tn

    # Front-pad one dummy row (cls slot) + back-pad to full tiles, in the same
    # copy as the patchify.  The output is written at exactly (b, n_tot, dim);
    # the last tile's out-of-bounds rows are masked by Pallas, so no final
    # slice or concatenate is needed.
    patches = jnp.pad(patches, ((0, 0), (1, n_seq_pad - n_tot), (0, 0)))

    # --- Fold LayerNorm(patch_dim) affine into the Linear -------------------
    w_f = params["ln1_g"][:, None] * params["w"]                 # (patch_dim, dim)
    b_f = params["b"] + params["ln1_b"] @ params["w"]            # (dim,)
    perm = np.arange(patch_dim).reshape(p, p, c).transpose(2, 0, 1).reshape(-1)
    w_f = w_f[perm, :]            # rows now in '(c p1 p2)' order (bf16 here for prod)

    # --- Fold LayerNorm(dim) beta + positional embedding --------------------
    pos = params["pos_embedding"].reshape(n_tot, dim)
    seq_bias = pos + params["ln2_b"][None, :]                    # row 0 unused
    seq_bias = jnp.pad(seq_bias, ((0, n_seq_pad - n_tot), (0, 0)))
    cls_row = params["cls_token"].reshape(1, dim) + pos[0:1]     # (1, dim)

    b_f = b_f.reshape(1, dim)
    g2 = params["ln2_g"].reshape(1, dim)

    # VMEM hint from the double-buffered block footprint (clamped 32..64 MiB).
    est = 4 * (2 * tn * patch_dim + 4 * tn * dim + patch_dim * dim + 3 * dim)
    vmem_limit = int(min(max(32 * 1024 * 1024, 2 * est), 64 * 1024 * 1024))

    out = pl.pallas_call(
        _patch_embed_kernel,
        out_shape=jax.ShapeDtypeStruct((b, n_tot, dim), out_dtype),
        grid_spec=pltpu.PrefetchScalarGridSpec(
            num_scalar_prefetch=0,
            # Batch innermost: seq_bias block index is constant across
            # consecutive steps -> Pallas skips its re-DMA (fetched once per
            # sequence tile instead of once per (tile, batch)).
            grid=(n_seq_tiles, b),
            in_specs=[
                pl.BlockSpec((None, tn, patch_dim), lambda j, i: (i, j, 0)),  # patches
                pl.BlockSpec((patch_dim, dim), lambda j, i: (0, 0)),          # folded W
                pl.BlockSpec((1, dim), lambda j, i: (0, 0)),                  # folded bias
                pl.BlockSpec((1, dim), lambda j, i: (0, 0)),                  # ln2 gamma
                pl.BlockSpec((tn, dim), lambda j, i: (j, 0)),                 # pos + ln2 beta
                pl.BlockSpec((1, dim), lambda j, i: (0, 0)),                  # cls + pos[0]
            ],
            out_specs=pl.BlockSpec((None, tn, dim), lambda j, i: (i, j, 0)),
        ),
        compiler_params=pltpu.CompilerParams(
            dimension_semantics=("parallel", "parallel"),
            vmem_limit_bytes=vmem_limit),
    )(patches, w_f, b_f, g2, seq_bias, cls_row)
    return out


def init_params(key, *, dim, image_size, patch_size):
    assert image_size % patch_size == 0
    num_patches = (image_size // patch_size) ** 2
    patch_dim = 3 * patch_size ** 2
    k1, k2, k3, k4, k5, k6, k7, k8 = jax.random.split(key, 8)
    bound = 1.0 / jnp.sqrt(patch_dim)
    return {
        # Non-trivial LN affines so the wrapper-side folding is exercised.
        "ln1_g": 1.0 + 0.05 * jax.random.normal(k5, (patch_dim,), jnp.float32),
        "ln1_b": 0.05 * jax.random.normal(k6, (patch_dim,), jnp.float32),
        "w": jax.random.uniform(k1, (patch_dim, dim), jnp.float32, -bound, bound),
        "b": jax.random.uniform(k2, (dim,), jnp.float32, -bound, bound),
        "ln2_g": 1.0 + 0.05 * jax.random.normal(k7, (dim,), jnp.float32),
        "ln2_b": 0.05 * jax.random.normal(k8, (dim,), jnp.float32),
        "pos_embedding": jax.random.normal(k3, (1, num_patches + 1, dim), jnp.float32),
        "cls_token": jax.random.normal(k4, (1, 1, dim), jnp.float32),
    }


def _reference(img, params, *, patch_size):
    # Pure-JAX f32 reference following PyTorch semantics exactly.
    b, c, H, W = img.shape
    p = patch_size
    h, w = H // p, W // p
    n = h * w
    patch_dim = c * p * p
    x = img.reshape(b, c, h, p, w, p).transpose(0, 2, 4, 3, 5, 1).reshape(b, n, patch_dim)

    def ln(v, g, be):
        mu = v.mean(-1, keepdims=True)
        var = ((v - mu) ** 2).mean(-1, keepdims=True)
        return (v - mu) / jnp.sqrt(var + LN_EPS) * g + be

    x = ln(x, params["ln1_g"], params["ln1_b"])
    x = x @ params["w"] + params["b"]
    x = ln(x, params["ln2_g"], params["ln2_b"])
    cls = jnp.broadcast_to(params["cls_token"], (b, 1, x.shape[-1]))
    x = jnp.concatenate([cls, x], axis=1)
    return x + params["pos_embedding"][:, : n + 1]


if __name__ == "__main__":
    dim = 32
    image_size = 16
    patch_size = 4
    batch = 2

    key = jax.random.PRNGKey(0)
    k_img, k_par = jax.random.split(key)
    # Non-zero mean pixels to exercise the two-pass LayerNorm statistics.
    img = 1.5 + 0.5 * jax.random.normal(k_img, (batch, 3, image_size, image_size),
                                        jnp.float32)
    params = init_params(k_par, dim=dim, image_size=image_size, patch_size=patch_size)

    fwd = jax.jit(functools.partial(image_embedder_forward, patch_size=patch_size))
    out = jax.block_until_ready(fwd(img, params))

    ref = _reference(img, params, patch_size=patch_size)
    n_tot = (image_size // patch_size) ** 2 + 1
    assert out.shape == (batch, n_tot, dim)
    assert bool(jnp.all(jnp.isfinite(out)))
    # f32 end-to-end (matmul in f32) -> tight tolerance vs. the pure-f32 ref.
    assert jnp.allclose(out, ref, atol=5e-4, rtol=5e-4)
    print("KERNEL_OK")
</pallas_src>

<mosaic_0001>
module attributes {stable_mosaic.version = 11 : i64} {
  func.func @_patch_embed_kernel(%arg0: i32, %arg1: i32, %arg2: memref<1x16x48xf32, #tpu.memory_space<vmem>>, %arg3: memref<48x32xf32, #tpu.memory_space<vmem>>, %arg4: memref<1x32xf32, #tpu.memory_space<vmem>>, %arg5: memref<1x32xf32, #tpu.memory_space<vmem>>, %arg6: memref<16x32xf32, #tpu.memory_space<vmem>>, %arg7: memref<1x32xf32, #tpu.memory_space<vmem>>, %arg8: memref<1x16x32xf32, #tpu.memory_space<vmem>>) attributes {dimension_semantics = [#tpu.dimension_semantics<parallel>, #tpu.dimension_semantics<parallel>], iteration_bounds = array<i64: 2, 2>, scalar_prefetch = 0 : i64, scratch_operands = 0 : i64, tpu.core_type = #tpu.core_type<tc>, window_params = [{transform_indices = @transform_0, window_bounds = array<i64: 1, 16, 48>}, {pipeline_mode = #tpu.pipeline_mode<synchronous>, transform_indices = @transform_1, window_bounds = array<i64: 48, 32>}, {pipeline_mode = #tpu.pipeline_mode<synchronous>, transform_indices = @transform_2, window_bounds = array<i64: 1, 32>}, {pipeline_mode = #tpu.pipeline_mode<synchronous>, transform_indices = @transform_3, window_bounds = array<i64: 1, 32>}, {transform_indices = @transform_4, window_bounds = array<i64: 16, 32>}, {pipeline_mode = #tpu.pipeline_mode<synchronous>, transform_indices = @transform_5, window_bounds = array<i64: 1, 32>}, {transform_indices = @transform_6, window_bounds = array<i64: 1, 16, 32>}]} {
    %c0 = arith.constant 0 : index
    %c0_0 = arith.constant 0 : index
    %c0_1 = arith.constant 0 : index
    %0 = vector.load %arg2[%c0, %c0_0, %c0_1] : memref<1x16x48xf32, #tpu.memory_space<vmem>>, vector<1x16x48xf32>
    %1 = vector.shape_cast %0 : vector<1x16x48xf32> to vector<16x48xf32>
    %cst = arith.constant dense<0.000000e+00> : vector<16xf32>
    %2 = vector.multi_reduction <add>, %1, %cst [1] : vector<16x48xf32> to vector<16xf32>
    %3 = vector.shape_cast %2 : vector<16xf32> to vector<16x1xf32>
    %cst_2 = arith.constant 4.800000e+01 : f32
    %4 = vector.broadcast %cst_2 : f32 to vector<16x1xf32>
    %5 = arith.divf %3, %4 : vector<16x1xf32>
    %6 = vector.broadcast %5 : vector<16x1xf32> to vector<16x48xf32>
    %7 = arith.subf %1, %6 : vector<16x48xf32>
    %8 = arith.mulf %7, %7 : vector<16x48xf32>
    %cst_3 = arith.constant dense<0.000000e+00> : vector<16xf32>
    %9 = vector.multi_reduction <add>, %8, %cst_3 [1] : vector<16x48xf32> to vector<16xf32>
    %10 = vector.shape_cast %9 : vector<16xf32> to vector<16x1xf32>
    %cst_4 = arith.constant 4.800000e+01 : f32
    %11 = vector.broadcast %cst_4 : f32 to vector<16x1xf32>
    %12 = arith.divf %10, %11 : vector<16x1xf32>
    %cst_5 = arith.constant 9.99999974E-6 : f32
    %13 = vector.broadcast %cst_5 : f32 to vector<16x1xf32>
    %14 = arith.addf %12, %13 : vector<16x1xf32>
    %15 = math.rsqrt %14 : vector<16x1xf32>
    %16 = vector.broadcast %15 : vector<16x1xf32> to vector<16x48xf32>
    %17 = arith.mulf %7, %16 : vector<16x48xf32>
    %c0_6 = arith.constant 0 : index
    %c0_7 = arith.constant 0 : index
    %18 = vector.load %arg3[%c0_6, %c0_7] : memref<48x32xf32, #tpu.memory_space<vmem>>, vector<48x32xf32>
    %cst_8 = arith.constant dense<0.000000e+00> : vector<16x32xf32>
    %19 = tpu.matmul %17, %18, %cst_8 {dimension_numbers = #tpu.dot_dimension_numbers<[1], [0], [0], [1], [0, 0, 1, 1], [], []>} : vector<16x48xf32>, vector<48x32xf32>, vector<16x32xf32> -> vector<16x32xf32>
    %c0_9 = arith.constant 0 : index
    %c0_10 = arith.constant 0 : index
    %20 = vector.load %arg4[%c0_9, %c0_10] : memref<1x32xf32, #tpu.memory_space<vmem>>, vector<1x32xf32>
    %21 = vector.broadcast %20 : vector<1x32xf32> to vector<16x32xf32>
    %22 = arith.addf %19, %21 : vector<16x32xf32>
    %cst_11 = arith.constant dense<0.000000e+00> : vector<16xf32>
    %23 = vector.multi_reduction <add>, %22, %cst_11 [1] : vector<16x32xf32> to vector<16xf32>
    %24 = vector.shape_cast %23 : vector<16xf32> to vector<16x1xf32>
    %cst_12 = arith.constant 3.200000e+01 : f32
    %25 = vector.broadcast %cst_12 : f32 to vector<16x1xf32>
    %26 = arith.divf %24, %25 : vector<16x1xf32>
    %27 = vector.broadcast %26 : vector<16x1xf32> to vector<16x32xf32>
    %28 = arith.subf %22, %27 : vector<16x32xf32>
    %29 = arith.mulf %28, %28 : vector<16x32xf32>
    %cst_13 = arith.constant dense<0.000000e+00> : vector<16xf32>
    %30 = vector.multi_reduction <add>, %29, %cst_13 [1] : vector<16x32xf32> to vector<16xf32>
    %31 = vector.shape_cast %30 : vector<16xf32> to vector<16x1xf32>
    %cst_14 = arith.constant 3.200000e+01 : f32
    %32 = vector.broadcast %cst_14 : f32 to vector<16x1xf32>
    %33 = arith.divf %31, %32 : vector<16x1xf32>
    %cst_15 = arith.constant 9.99999974E-6 : f32
    %34 = vector.broadcast %cst_15 : f32 to vector<16x1xf32>
    %35 = arith.addf %33, %34 : vector<16x1xf32>
    %36 = math.rsqrt %35 : vector<16x1xf32>
    %37 = vector.broadcast %36 : vector<16x1xf32> to vector<16x32xf32>
    %38 = arith.mulf %28, %37 : vector<16x32xf32>
    %c0_16 = arith.constant 0 : index
    %c0_17 = arith.constant 0 : index
    %39 = vector.load %arg5[%c0_16, %c0_17] : memref<1x32xf32, #tpu.memory_space<vmem>>, vector<1x32xf32>
    %40 = vector.broadcast %39 : vector<1x32xf32> to vector<16x32xf32>
    %41 = arith.mulf %38, %40 : vector<16x32xf32>
    %c0_18 = arith.constant 0 : index
    %c0_19 = arith.constant 0 : index
    %42 = vector.load %arg6[%c0_18, %c0_19] : memref<16x32xf32, #tpu.memory_space<vmem>>, vector<16x32xf32>
    %43 = arith.addf %41, %42 : vector<16x32xf32>
    %c0_20 = arith.constant 0 : index
    %c0_21 = arith.constant 0 : index
    %c0_22 = arith.constant 0 : index
    %44 = vector.load %arg8[%c0_20, %c0_21, %c0_22] : memref<1x16x32xf32, #tpu.memory_space<vmem>>, vector<1x16x32xf32>
    %45 = vector.shape_cast %44 : vector<1x16x32xf32> to vector<16x32xf32>
    %46 = vector.shape_cast %43 : vector<16x32xf32> to vector<1x16x32xf32>
    tpu.vector_store %arg8[%c0_20, %c0_21, %c0_22], %46 {strides = array<i32>} : memref<1x16x32xf32, #tpu.memory_space<vmem>>, vector<1x16x32xf32>,
    %c0_i32 = arith.constant 0 : i32
    %47 = arith.cmpi eq, %arg0, %c0_i32 : i32
    %48 = arith.extui %47 : i1 to i32
    %c0_i32_23 = arith.constant 0 : i32
    %49 = arith.cmpi ne, %48, %c0_i32_23 : i32
    scf.if %49 {
      %c0_24 = arith.constant 0 : index
      %c0_25 = arith.constant 0 : index
      %50 = vector.load %arg7[%c0_24, %c0_25] : memref<1x32xf32, #tpu.memory_space<vmem>>, vector<1x32xf32>
      %c0_26 = arith.constant 0 : index
      %c0_27 = arith.constant 0 : index
      %c0_28 = arith.constant 0 : index
      %51 = vector.load %arg8[%c0_26, %c0_27, %c0_28] : memref<1x16x32xf32, #tpu.memory_space<vmem>>, vector<1x1x32xf32>
      %52 = vector.shape_cast %51 : vector<1x1x32xf32> to vector<1x32xf32>
      %53 = vector.shape_cast %50 : vector<1x32xf32> to vector<1x1x32xf32>
      tpu.vector_store %arg8[%c0_26, %c0_27, %c0_28], %53 {strides = array<i32>} : memref<1x16x32xf32, #tpu.memory_space<vmem>>, vector<1x1x32xf32>,
    } else {
    }
    return
  }
  func.func @transform_0(%arg0: i32, %arg1: i32) -> (i32, i32, i32) {
    %c0_i32 = arith.constant 0 : i32
    %c0_i32_0 = arith.constant 0 : i32
    return %arg1, %arg0, %c0_i32 : i32, i32, i32
  }
  func.func @transform_1(%arg0: i32, %arg1: i32) -> (i32, i32) {
    %c0_i32 = arith.constant 0 : i32
    %c0_i32_0 = arith.constant 0 : i32
    %c0_i32_1 = arith.constant 0 : i32
    return %c0_i32, %c0_i32_0 : i32, i32
  }
  func.func @transform_2(%arg0: i32, %arg1: i32) -> (i32, i32) {
    %c0_i32 = arith.constant 0 : i32
    %c0_i32_0 = arith.constant 0 : i32
    %c0_i32_1 = arith.constant 0 : i32
    return %c0_i32, %c0_i32_0 : i32, i32
  }
  func.func @transform_3(%arg0: i32, %arg1: i32) -> (i32, i32) {
    %c0_i32 = arith.constant 0 : i32
    %c0_i32_0 = arith.constant 0 : i32
    %c0_i32_1 = arith.constant 0 : i32
    return %c0_i32, %c0_i32_0 : i32, i32
  }
  func.func @transform_4(%arg0: i32, %arg1: i32) -> (i32, i32) {
    %c0_i32 = arith.constant 0 : i32
    %c0_i32_0 = arith.constant 0 : i32
    return %arg0, %c0_i32 : i32, i32
  }
  func.func @transform_5(%arg0: i32, %arg1: i32) -> (i32, i32) {
    %c0_i32 = arith.constant 0 : i32
    %c0_i32_0 = arith.constant 0 : i32
    %c0_i32_1 = arith.constant 0 : i32
    return %c0_i32, %c0_i32_0 : i32, i32
  }
  func.func @transform_6(%arg0: i32, %arg1: i32) -> (i32, i32, i32) {
    %c0_i32 = arith.constant 0 : i32
    %c0_i32_0 = arith.constant 0 : i32
    return %arg1, %arg0, %c0_i32 : i32, i32, i32
  }
}

</mosaic_0001>

<bundles_post_ra>
// kernel: image_embedder_forward.1
= control target key start
LH: loop header
LB: loop body
LE: loop exit
PB: predicated region body
PF: predicated region fallthrough
CT: control target
= control target key end

     0   :  { %s1084_s21 = smov 0   ;;  %s1086_s22 = smov 0   ;;  %s1259_s0 = inlined_call_operand.vmem [shape: f32[2,32,48], index: 0, kind: input, shape index: {}]   ;;  %s1260_s1 = inlined_call_operand.vmem [shape: f32[48,32], index: 1, kind: input, shape index: {}]   ;;  %s1261_s2 = inlined_call_operand.vmem [shape: f32[1,32], index: 2, kind: input, shape index: {}]   ;;  %s1262_s3 = inlined_call_operand.vmem [shape: f32[1,32], index: 3, kind: input, shape index: {}]   ;;  %s1263_s4 = inlined_call_operand.vmem [shape: f32[32,32], index: 4, kind: input, shape index: {}]   ;;  %s1264_s5 = inlined_call_operand.vmem [shape: f32[1,32], index: 5, kind: input, shape index: {}]   ;;  %s1265_s6 = inlined_call_operand.vmem [shape: f32[2,17,32], index: 6, kind: output, shape index: {}]  }
   0x1   :  { %s1088_s23 = smov 0   ;;  %s1090_s24 = smov 0  }
   0x2   :  { %s1092_s25 = smov 0   ;;  %s1094_s26 = smov 0  }
   0x3   :  { %s1096_s27 = smov 0  }
   0x4 LB: > { %s25_s28 = sadd.s32 1, %s1007_s25  ;;  %s28_s29 = sadd.s32 1, %s1011_s26  ;;  %s1015_s27 = sphi %s1096_s27, %s16_s27   ;;  %s1011_s26 = sphi %s1094_s26, %s1272_s26   ;;  %s1007_s25 = sphi %s1092_s25, %s1271_s25   ;;  %s1003_s24 = sphi %s1090_s24, %s1270_s24   ;;  %s999_s23 = sphi %s1088_s23, %s1269_s23   ;;  %s995_s22 = sphi %s1086_s22, %s1268_s22   ;;  %s991_s21 = sphi %s1084_s21, %s1267_s21  }
   0x5   : > { %p26_p0 = scmp.ge.s32.totalorder %s25_s28, 2  ;;  %s730_s30 = sadd.s32 4294967295, %s1015_s27  }
   0x6   : > { %p185_p1 = scmp.ne.s32.totalorder %s995_s22, %s991_s21  ;;  %p186_p2 = scmp.eq.s32.totalorder %s730_s30, 3 }
   0x7   : > { %s1274_s28 = smov (%p26_p0, %s25_s28), 0  ;;  %s1276_s29 = smov (!%p26_p0, %s28_s29), %s1011_s26 }
   0x8   : > { %s170_s7 = ssub.s32 %s1007_s25, %s1274_s28  ;;  %p30_p3 = scmp.ge.s32.totalorder %s1276_s29, 2 }
   0x9   : > { %p734_p4 = scmp.ge.s32.totalorder %s1015_s27, 1  ;;  %p1130_p5 = por %p186_p2, %p185_p1 }
   0xa   : > { %p244_p6 = scmp.lt.s32.totalorder %s1015_s27, 5  ;;  %s1278_s29 = smov (%p30_p3, %s1276_s29), 0 }
   0xb   : > { %s171_s9 = ssub.s32 %s1011_s26, %s1278_s29  ;;  %s175_s11 = sadd.s32 1, %s995_s22 }
   0xc   : > { %p245_p7 = pnand %p734_p4, %p244_p6  ;;  %s172_s10 = sor.u32 %s171_s9, %s170_s7 }
   0xd   : > { %p173_p8 = scmp.eq.s32.totalorder %s172_s10, 0  ;;  %s1144_s13 = sshll.u32 (!%p245_p7), %s1003_s24, 1  ;;  %vm305_vm0 = vcmask (!%p245_p7), 392192   ;;  %v333_v14 = vld [vmem:[%s1260_s1] sm:$0xff] (!%p245_p7)  ;;  %v334_v15 = vld [vmem:[%s1260_s1 + $0x8] sm:$0xff] (!%p245_p7)  ;;  %v335_v17 = vld [vmem:[%s1260_s1 + $0x10] sm:$0xff] (!%p245_p7) }
   0xe   : > { %248 = sbr.rel (%p245_p7) target bundleno = 927 (0x39f), region = 44  ;;  %p283_p9 = scmp.lt.s32.totalorder (!%p245_p7), %s999_s23, 1  ;;  %v788_v16 = vpack.c.bf16 (!%p245_p7), %v334_v15, %v333_v14  ;;  %v336_v18 = vld [vmem:[%s1260_s1 + $0x18] sm:$0xff] (!%p245_p7)  ;;  %v337_v19 = vld [vmem:[%s1260_s1 + $0x20] sm:$0xff] (!%p245_p7)  ;;  %v338_v21 = vld [vmem:[%s1260_s1 + $0x28] sm:$0xff] (!%p245_p7)  ;;  %vm427_vm1 = vcmask (!%p245_p7), 261120  }
   0xf   : > { %s1141_s12 = scalar_select %p173_p8, %s995_s22, %s175_s11  }
  0x10   : > { %p285_p10 = scmp.lt.s32.totalorder (!%p245_p7), %s1144_s13, 3  ;;  %789 = vmatprep.subr.bf16.mxu0 (!%p245_p7), %v788_v16  ;;  %v792_v20 = vpack.c.bf16 (!%p245_p7), %v336_v18, %v335_v17  ;;  %v796_v22 = vpack.c.bf16 (!%p245_p7), %v338_v21, %v337_v19  ;;  %v741_v33 = vld [vmem:[%s1261_s2] ss:$0 sm:$0xff] (!%p245_p7)  ;;  %p745_p11 = scmp.ne.s32.totalorder (!%p245_p7), %s1003_s24, 0 }
  0x11   : > { %791 = vmatpush3.bf16.msra.mxu0 (!%p245_p7), %v788_v16  ;;  %v744_v57 = vld [vmem:[%s1262_s3] ss:$0 sm:$0xff] (!%p245_p7) }
  0x12   : > { %793 = vmatprep.subr.bf16.mxu0 (!%p245_p7), %v792_v20 }
  0x15   : > { %s284_s14 = scalar_select %p283_p9, %s999_s23, 1  ;;  %795 = vmatpush3.bf16.msra.mxu0 %v792_v20 }
  0x16   : > { %s1150_s15 = scalar_select %p285_p10, %s1144_s13, 3  ;;  %797 = vmatprep.subr.bf16.mxu0 %v796_v22 }
  0x17   : > { %s737_s16 = sshll.u32 %s284_s14, 2  ;;  %s279_s14 = sand.u32 1, %s991_s21   ;;  %vm475_vm2 = vcmask (!%p745_p11), 253952  }
  0x18   : > { %s288_s17 = sadd.s32 %s737_s16, %s1150_s15  ;;  %s740_s11 = sshll.u32 %s1150_s15, 3 }
  0x19   : > { %s738_s18 = sshll.u32 %s288_s17, 3  ;;  %799 = vmatpush3.bf16.msra.mxu0 %v796_v22 }
  0x1a   : > { %s290_s30 = scalar_lea.vmem %s1259_s0, %s738_s18  ;;  %s296_s18 = scalar_lea.vmem %s1263_s4, %s740_s11 }
  0x1b   : > { %v303_v0 = vld [vmem:[%s290_s30] sm:$0xff]  ;;  %v304_v1 = vld [vmem:[%s290_s30 + $0x8] sm:$0xff]  ;;  %s735_s30 = sshll.u32 %s279_s14, 4 }
  0x1c   : > { %v306_v2 = vsel %vm305_vm0, %v303_v0, 0.0  ;;  %v309_v3 = vsel %vm305_vm0, %v304_v1, 0.0  ;;  %v465_v60 = vld [vmem:[%s296_s18 + $0x8] sm:$0xff]  ;;  %v464_v62 = vld [vmem:[%s296_s18] sm:$0xff]  ;;  %s1195_s21 = scalar_lea.vmem [#allocation2], %s735_s30  }
  0x1d   : > { %307 = vadd.xlane.f32.xlu0 %v306_v2 }
  0x21   : > { %310 = vadd.xlane.f32.xlu0 %v309_v3  ;;  %v474_v3 = vld [vmem:[%s1264_s5] sm:$0x1] (!%p745_p11) }
  0xaa   : > { %v308_v4 = vpop.xlane.xlu0 %307 }
  0xab   : > { %v313_v5 = vmul.f32 0.020833334, %v308_v4 }
  0xad   : > { %v315_v6 = vsub.f32 %v303_v0, %v313_v5 }
  0xae   : > { %v311_v7 = vpop.xlane.xlu0 %310 }
  0xaf   : > { %v314_v8 = vmul.f32 0.020833334, %v311_v7  ;;  %v317_v9 = vmul.f32 %v315_v6, %v315_v6 }
  0xb1   : > { %v316_v10 = vsub.f32 %v304_v1, %v314_v8  ;;  %v319_v11 = vsel %vm305_vm0, %v317_v9, 0.0 }
  0xb2   : > { %320 = vadd.xlane.f32.xlu1 %v319_v11 }
  0xb3   : > { %v318_v12 = vmul.f32 %v316_v10, %v316_v10 }
  0xb5   : > { %v322_v13 = vsel %vm305_vm0, %v318_v12, 0.0 }
  0xb6   : > { %323 = vadd.xlane.f32.xlu1 %v322_v13 }
 0x13f   : > { %v321_v23 = vpop.xlane.xlu1 %320 }
 0x140   : > { %v325_v24 = vmul.f32 0.020833334, %v321_v23 }
 0x142   : > { %v327_v25 = vadd.f32 1e-05, %v325_v24 }
 0x143   : > { %v324_v26 = vpop.xlane.xlu1 %323 }
 0x144   : > { %921 = vrsqrt.f32 %v327_v25  ;;  %v326_v27 = vmul.f32 0.020833334, %v324_v26 }
 0x146   : > { %v328_v28 = vadd.f32 1e-05, %v326_v27 }
 0x148   : > { %923 = vrsqrt.f32 %v328_v28 }
 0x14e   : > { %v922_v29 = vpop.eup %921 }
 0x14f   : > { %v331_v30 = vmul.f32 %v922_v29, %v315_v6 }
 0x151   : > { %785 = vmatprep.mubr.msk.f32.mxu0 %vm305_vm0, %v331_v30 }
 0x152   : > { %v924_v31 = vpop.eup %923 }
 0x153   : > { %v332_v32 = vmul.f32 %v924_v31, %v316_v10 }
 0x155   : > { %786 = vmatmul.mubr.msk.f32.vlgmr.msra.gmra.mrb[0].mxu0 %vm305_vm0, %v332_v32 }
 0x228   : > { %v787_v34 = vpop.f32.mrb[0].mxu0 }
 0x229   : > { %v424_v35 = vadd.f32 %v787_v34, %v741_v33  ;;  %v418_v36 = vpop.f32.mrb[1].mxu0 }
 0x22a   : > { %v419_v37 = vadd.f32 %v741_v33, %v418_v36 }
 0x22b   : > { %v431_v38 = vsel %vm427_vm1, %v424_v35, 0.0 }
 0x22c   : > { %432 = vadd.xlane.f32.xlu1 %v431_v38  ;;  %v428_v39 = vsel %vm427_vm1, %v419_v37, 0.0 }
 0x22d   : > { %429 = vadd.xlane.f32.xlu0 %v428_v39 }
 0x2b9   : > { %v433_v40 = vpop.xlane.xlu1 %432 }
 0x2ba   : > { %v436_v41 = vmul.f32 0.03125, %v433_v40  ;;  %v430_v42 = vpop.xlane.xlu0 %429 }
 0x2bb   : > { %v435_v43 = vmul.f32 0.03125, %v430_v42 }
 0x2bc   : > { %v438_v44 = vsub.f32 %v424_v35, %v436_v41 }
 0x2bd   : > { %v437_v45 = vsub.f32 %v419_v37, %v435_v43 }
 0x2be   : > { %v440_v46 = vmul.f32 %v438_v44, %v438_v44 }
 0x2bf   : > { %v439_v47 = vmul.f32 %v437_v45, %v437_v45 }
 0x2c0   : > { %v444_v48 = vsel %vm427_vm1, %v440_v46, 0.0 }
 0x2c1   : > { %445 = vadd.xlane.f32.xlu1 %v444_v48  ;;  %v441_v49 = vsel %vm427_vm1, %v439_v47, 0.0 }
 0x2c2   : > { %442 = vadd.xlane.f32.xlu0 %v441_v49 }
 0x34e   : > { %v446_v50 = vpop.xlane.xlu1 %445 }
 0x34f   : > { %v448_v51 = vmul.f32 0.03125, %v446_v50  ;;  %v443_v52 = vpop.xlane.xlu0 %442 }
 0x350   : > { %v447_v53 = vmul.f32 0.03125, %v443_v52 }
 0x351   : > { %v450_v54 = vadd.f32 1e-05, %v448_v51 }
 0x352   : > { %v449_v55 = vadd.f32 1e-05, %v447_v53 }
 0x353   : > { %925 = vrsqrt.f32 %v450_v54 }
 0x354   : > { %927 = vrsqrt.f32 %v449_v55 }
 0x35d   : > { %v926_v56 = vpop.eup %925 }
 0x35e   : > { %v928_v58 = vpop.eup %927  ;;  %v454_v59 = vmul.f32 %v926_v56, %v438_v44 }
 0x35f   : > { %v453_v61 = vmul.f32 %v928_v58, %v437_v45  ;;  %473 = sbr.rel (%p745_p11) target bundleno = 871 (0x367), region = 48 }
 0x360   : > { %v463_v63 = vmul.f32 %v744_v57, %v454_v59 }
 0x361   : > { %v462_v0 = vmul.f32 %v744_v57, %v453_v61 }
 0x362   : > { %v467_v1 = vadd.f32 %v465_v60, %v463_v63 }
 0x363   : > { %v466_v2 = vadd.f32 %v464_v62, %v462_v0 }
 0x364   : > { %469 = vst.msk [vmem:[%s1195_s21 + $0x8] sm:$0xff] %vm427_vm1, %v467_v1 }
 0x365   : > { %468 = vst.msk [vmem:[%s1195_s21] sm:$0xff] %vm427_vm1, %v466_v2 }
 0x366   : > { %476 = vst.msk [vmem:[%s1195_s21] sm:$0x1] %vm475_vm2, %v474_v3 }
 0x367 PF: > { %483 = sbr.rel (!%p1130_p5) target bundleno = 927 (0x39f), region = 52  ;;  %s485_s9 = ssub.s32 (%p1130_p5), 3, %s1144_s13 }
 0x368   : > { %s800_s10 = smul.u32 (%p1130_p5), 3, %s999_s23  ;;  %p486_p12 = scmp.lt.s32.totalorder (%p1130_p5), %s485_s9, 2 }
 0x36a   : > { %s491_s11 = sadd.s32 (%p1130_p5), %s800_s10, %s1144_s13 }
 0x36b   : > { %s750_s24 = sshll.u32 (%p1130_p5), %s491_s11, 3 }
 0x36c   : > { %s1217_s18 = scalar_lea.vmem (%p1130_p5), %s1265_s6, %s750_s24  }
 0x36e   : > { %s1280_s9 = smov (!%p486_p12, %s485_s9), 2 }
 0x36f   : > { %s748_s14 = sshll.u32 %s1280_s9, 7 }
 0x370   : > { %p751_p13 = scmp.eq.s32.totalorder %s748_s14, 0 }
 0x371   : > { %s1220_s8 = sshrl.u32 (!%p751_p13), %s1280_s9, 1 }
 0x372   : > { %496 = sbr.rel (%p751_p13) target bundleno = 927 (0x39f), region = 56  ;;  %p752_p0 = scmp.le.s32.totalorder (!%p751_p13), %s1220_s8, 0 }
 0x379   : > { %669 = sbr.rel (%p752_p0) target bundleno = 906 (0x38a), region = 135  ;;  %s1017_s23 = smov (!%p752_p0), %s1217_s18  }
 0x37a   : > { %s1021_s13 = smov (!%p752_p0), %s1195_s21   ;;  %s1025_s19 = smov (!%p752_p0), 0  }
 0x37b   : > { %s1029_s20 = smov (!%p752_p0), 0  }
 0x380 LB: >> { %v560_v4 = vld [vmem:[%s1023_s13] sm:$0xff]  ;;  %v562_v5 = vld [vmem:[%s1023_s13 + $0x8] sm:$0xff]  ;;  %s564_s30 = sadd.s32 1, %s1027_s19  ;;  %s554_s20 = sadd.s32 1, %s1031_s20   ;;  %s1031_s20 = sphi %s1029_s20, %s554_s20   ;;  %s1027_s19 = sphi %s1025_s19, %s1026_s19   ;;  %s1023_s13 = sphi %s1021_s13, %s569_s13   ;;  %s1019_s23 = sphi %s1017_s23, %s570_s23  }
 0x381   : >> { %561 = vst [vmem:[%s1019_s23] sm:$0xff] %v560_v4  ;;  %563 = vst [vmem:[%s1019_s23 + $0x8] sm:$0xff] %v562_v5  ;;  %p565_p1 = scmp.ge.s32.totalorder %s564_s30, %s1220_s8  ;;  %p553_p2 = scmp.ge.s32.totalorder %s554_s20, %s1220_s8 }
 0x383   : >> { %s1282_s30 = smov (%p565_p1, %s564_s30), 0  ;;  %556 = sbr.rel (!%p553_p2) target bundleno = 896 (0x380), region = 141 }
 0x384   : >> { %s753_s15 = sshll.u32 %s1282_s30, 4  ;;  %s1026_s19 = smov %s1282_s30  }
 0x385   : >> { %s569_s13 = scalar_lea.vmem %s1195_s21, %s753_s15 [#allocation2]   ;;  %s570_s23 = scalar_lea.vmem %s1217_s18, %s753_s15  }
 0x38a PF: > { %s1230_s7 = sand.u32 1, %s1280_s9   ;;  %s763_s10 = sshll.u32 %s1220_s8, 4 }
 0x38b   : > { %s575_s11 = scalar_lea.vmem %s1195_s21, %s763_s10 [#allocation2]   ;;  %s577_s24 = scalar_lea.vmem %s1217_s18, %s763_s10  }
 0x38c   : > { %p758_p3 = scmp.le.s32.totalorder %s1230_s7, 0 }
 0x38d   : > { %s1033_s14 = smov (!%p758_p3), %s577_s24   ;;  %s1037_s16 = smov (!%p758_p3), %s575_s11  }
 0x38e   : > { %683 = sbr.rel (%p758_p3) target bundleno = 927 (0x39f), region = 146  ;;  %s1041_s17 = smov (!%p758_p3), 0  }
 0x38f   : > { %s1045_s23 = smov (!%p758_p3), 0  }
 0x395 LB: >> { %v587_v6 = vld [vmem:[%s1039_s16] sm:$0xff]  ;;  %s589_s9 = sadd.s32 1, %s1043_s17  ;;  %s581_s23 = sadd.s32 1, %s1047_s23   ;;  %s1047_s23 = sphi %s1045_s23, %s581_s23   ;;  %s1043_s17 = sphi %s1041_s17, %s1042_s17   ;;  %s1039_s16 = sphi %s1037_s16, %s594_s16   ;;  %s1035_s14 = sphi %s1033_s14, %s595_s14  }
 0x396   : >> { %588 = vst [vmem:[%s1035_s14] sm:$0xff] %v587_v6  ;;  %p590_p4 = scmp.ge.s32.totalorder %s589_s9, %s1230_s7  ;;  %p580_p5 = scmp.ge.s32.totalorder %s581_s23, %s1230_s7 }
 0x398   : >> { %s1284_s9 = smov (%p590_p4, %s589_s9), 0  ;;  %583 = sbr.rel (!%p580_p5) target bundleno = 917 (0x395), region = 152 }
 0x399   : >> { %s759_s21 = sshll.u32 %s1284_s9, 3  ;;  %s1042_s17 = smov %s1284_s9  }
 0x39a   : >> { %s594_s16 = scalar_lea.vmem %s575_s11, %s759_s21 [#allocation2]   ;;  %s595_s14 = scalar_lea.vmem %s577_s24, %s759_s21  }
 0x39f PF: > { %s16_s27 = sadd.s32 1, %s1015_s27   ;;  %s1267_s21 = smov %s995_s22 }
 0x3a0   : > { %p13_p6 = scmp.ge.s32.totalorder %s16_s27, 6   ;;  %s1268_s22 = smov %s1141_s12 }
 0x3a1   : > { %s1269_s23 = smov %s1007_s25  ;;  %s1270_s24 = smov %s1011_s26 }
 0x3a2   : > { %s1271_s25 = smov %s1274_s28  ;;  %s1272_s26 = smov %s1278_s29 }
 0x3a3   :  { %15 = sbr.rel (!%p13_p6) target bundleno = 4 (0x4), region = 163 }

</bundles_post_ra>
